<compile_context>
chip_gen: v7x
topology: tpu7x:2x2x1
jax: 0.10.0
libtpu: 0.0.40
codegen_flags: <defaults>
</compile_context>

<pallas_src>
import functools
import math

import jax
import jax.numpy as jnp
import numpy as np
from jax.experimental import pallas as pl
from jax.experimental.pallas import tpu as pltpu


def _pick_tile(n, target, multiple=8):
    """Largest tile <= target that divides n and is a multiple of `multiple`.

    Falls back to the full dimension (always legal) if no such divisor exists.
    """
    if n <= target:
        return n
    t = (target // multiple) * multiple
    while t >= multiple:
        if n % t == 0:
            return t
        t -= multiple
    # TODO(synk): prime-ish n falls back to one full-size block; a pl.cdiv grid with
    #             tail masking would bound VMEM better for such shapes.
    return n


def _qkv_proj_kernel(x_ref, w_ref, qkv_ref, *, compute_dtype):
    # x_ref: (tm, C) f32, w_ref: (C, 3H) compute_dtype (scale already folded into q cols)
    x = x_ref[...].astype(compute_dtype)
    qkv_ref[...] = jnp.dot(
        x, w_ref[...], preferred_element_type=jnp.float32).astype(qkv_ref.dtype)


def _flash_attn_kernel(q_ref, kv_ref, o_ref, m_sc, l_sc, acc_sc,
                       *, nq, head_size, tq, tkv, approx_recip):
    # q_ref: (1, tq, 3H) packed qkv for the q rows; kv_ref: (1, tkv, 3H) packed qkv
    # for the kv rows; o_ref: (1, tq, H).  Scratch: m/l (tq,1) f32, acc (tq,H) f32.
    h = head_size
    qi = pl.program_id(0) % nq
    ki = pl.program_id(1)
    nk = pl.num_programs(1)

    q_start = qi * tq
    kv_start = ki * tkv

    @pl.when(ki == 0)
    def _init():
        m_sc[...] = jnp.full(m_sc.shape, -jnp.inf, dtype=m_sc.dtype)
        l_sc[...] = jnp.zeros(l_sc.shape, dtype=l_sc.dtype)
        acc_sc[...] = jnp.zeros(acc_sc.shape, dtype=acc_sc.dtype)

    def _update(masked):
        q = q_ref[0][:, h:2 * h]          # (tq, H), scale pre-folded into weights
        kv = kv_ref[0]                    # (tkv, 3H)
        k = kv[:, :h]                     # (tkv, H)
        v = kv[:, 2 * h:]                 # (tkv, H)
        # Contract on H directly -- no materialized k.T (no XLU transpose).
        s = jax.lax.dot_general(q, k, (((1,), (1,)), ((), ())),
                                preferred_element_type=jnp.float32)  # (tq, tkv)
        if masked:  # only diagonal-straddling tiles pay for the mask
            row = q_start + jax.lax.broadcasted_iota(jnp.int32, (tq, tkv), 0)
            col = kv_start + jax.lax.broadcasted_iota(jnp.int32, (tq, tkv), 1)
            s = jnp.where(col <= row, s, -jnp.inf)
        m_prev = m_sc[...]
        m_new = jnp.maximum(m_prev, jnp.max(s, axis=-1, keepdims=True))
        alpha = jnp.exp(m_prev - m_new)
        p = jnp.exp(s - m_new)
        l_sc[...] = alpha * l_sc[...] + jnp.sum(p, axis=-1, keepdims=True)
        acc_sc[...] = alpha * acc_sc[...] + jnp.dot(
            p.astype(v.dtype), v, preferred_element_type=jnp.float32)
        m_sc[...] = m_new

    # Strictly below the diagonal: every key is visible -> no mask work.
    @pl.when(kv_start + (tkv - 1) <= q_start)
    def _below():
        _update(masked=False)

    # Diagonal-straddling tile: build and apply the causal mask.
    @pl.when(jnp.logical_and(kv_start <= q_start + (tq - 1),
                             kv_start + (tkv - 1) > q_start))
    def _diag():
        _update(masked=True)

    # Fully-above-diagonal tiles fall through both branches (no compute; their DMA
    # was already suppressed by the clamped index_map).

    @pl.when(ki == nk - 1)
    def _finalize():
        inv = pl.reciprocal(l_sc[...], approx=approx_recip)
        o_ref[0] = (acc_sc[...] * inv).astype(o_ref.dtype)


def head_forward(x, wk, wq, wv, *, compute_dtype=jnp.bfloat16):
    """Single-head causal self-attention (eval mode, dropout = identity).

    x:  (B, T, C) float32
    wk/wq/wv: (C, H) float32  (nn.Linear(C, H, bias=False) weights stored as (C, H))
    returns: (B, T, H) in x.dtype
    """
    B, T, C = x.shape
    H = wk.shape[1]
    cdt = jnp.dtype(compute_dtype)
    mult = 16 if cdt == jnp.dtype(jnp.bfloat16) else 8   # bf16 sublane packing

    # Fold 1/sqrt(H) into the q weight columns (once, constant-foldable) and pack
    # [k | q | v] so kernel 1 is a single matmul with a single wide store.
    scale = jnp.float32(H) ** -0.5
    w_qkv = jnp.concatenate([wk, wq * scale, wv], axis=1).astype(compute_dtype)

    BT = B * T
    x2 = x.reshape(BT, C)

    # ---- Kernel 1: fused QKV projection over the flattened (B*T, C) rows ----
    in_bytes = x2.dtype.itemsize
    out_bytes = cdt.itemsize

    def k1_vmem(tm):
        return (2 * tm * C * in_bytes            # double-buffered x tile
                + 2 * C * 3 * H * out_bytes      # packed weight (double-buffered)
                + 2 * tm * 3 * H * out_bytes)    # double-buffered output tile

    VMEM_BUDGET = 40 * 1024 * 1024               # conservative for v7x's 64 MiB VMEM
    tm_target = 512                              # mem-bound roofline sweet spot
    while tm_target > mult and k1_vmem(tm_target) > VMEM_BUDGET:
        tm_target //= 2
    if BT // tm_target < 2 and BT >= 4 * mult:
        tm_target = (BT // 2 // mult) * mult     # keep both v7x TensorCores busy
    tm = _pick_tile(BT, max(tm_target, mult), multiple=mult)
    k1_limit = int(min(48 * 1024 * 1024, max(16 * 1024 * 1024, 2 * k1_vmem(tm))))

    qkv = pl.pallas_call(
        functools.partial(_qkv_proj_kernel, compute_dtype=compute_dtype),
        out_shape=jax.ShapeDtypeStruct((BT, 3 * H), compute_dtype),
        grid_spec=pltpu.PrefetchScalarGridSpec(
            num_scalar_prefetch=0,
            grid=(BT // tm,),
            in_specs=[
                pl.BlockSpec((tm, C), lambda i: (i, 0)),
                pl.BlockSpec((C, 3 * H), lambda i: (0, 0)),
            ],
            out_specs=pl.BlockSpec((tm, 3 * H), lambda i: (i, 0)),
        ),
        compiler_params=pltpu.CompilerParams(
            dimension_semantics=("parallel",),
            vmem_limit_bytes=k1_limit,
        ),
    )(x2, w_qkv)

    qkv = qkv.reshape(B, T, 3 * H)

    # ---- Kernel 2: flash attention over the packed QKV (no q/k/v HBM slicing) ----
    tq = _pick_tile(T, 128, multiple=mult)
    tkv = _pick_tile(T, 256, multiple=mult)
    nq = T // tq
    nkv = T // tkv
    approx = cdt != jnp.dtype(jnp.float32)

    def q_idx(p, j):
        return (p // nq, p % nq, 0)

    def kv_idx(p, j):
        qi = p % nq
        # Clamp fully-above-diagonal KV tiles onto the last tile this q-tile needs:
        # skipped iterations re-use the resident block and issue no new DMA.
        last_needed = ((qi + 1) * tq - 1) // tkv
        return (p // nq, jnp.minimum(j, last_needed), 0)

    out = pl.pallas_call(
        functools.partial(_flash_attn_kernel, nq=nq, head_size=H,
                          tq=tq, tkv=tkv, approx_recip=approx),
        out_shape=jax.ShapeDtypeStruct((B, T, H), x.dtype),
        grid_spec=pltpu.PrefetchScalarGridSpec(
            num_scalar_prefetch=0,
            grid=(B * nq, nkv),
            in_specs=[
                pl.BlockSpec((1, tq, 3 * H), q_idx),
                pl.BlockSpec((1, tkv, 3 * H), kv_idx),
            ],
            out_specs=pl.BlockSpec((1, tq, H), q_idx),
            scratch_shapes=[
                pltpu.VMEM((tq, 1), jnp.float32),   # running max
                pltpu.VMEM((tq, 1), jnp.float32),   # running sum
                pltpu.VMEM((tq, H), jnp.float32),   # output accumulator
            ],
        ),
        compiler_params=pltpu.CompilerParams(
            dimension_semantics=("parallel", "arbitrary"),
            vmem_limit_bytes=32 * 1024 * 1024,
        ),
    )(qkv, qkv)

    return out


if __name__ == "__main__":
    # Small shapes consistent with the module: batch=2, seq=8, embed=32, head=16
    B, T, C, H = 2, 8, 32, 16
    dropout = 0.0  # identity in eval mode

    key = jax.random.PRNGKey(0)
    kx, kk, kq, kv = jax.random.split(key, 4)

    x = jax.random.normal(kx, (B, T, C), dtype=jnp.float32)
    bound = 1.0 / math.sqrt(C)
    wk = jax.random.uniform(kk, (C, H), jnp.float32, -bound, bound)
    wq = jax.random.uniform(kq, (C, H), jnp.float32, -bound, bound)
    wv = jax.random.uniform(kv, (C, H), jnp.float32, -bound, bound)

    # bf16 MXU-operand path (default) and full-f32 path (exact semantics check)
    out_bf16 = head_forward(x, wk, wq, wv, compute_dtype=jnp.bfloat16)
    out_f32 = head_forward(x, wk, wq, wv, compute_dtype=jnp.float32)
    jax.block_until_ready((out_bf16, out_f32))

    # float64 numpy reference (same math as the PyTorch module, eval mode)
    xn = np.asarray(x, np.float64)
    wkn, wqn, wvn = (np.asarray(w, np.float64) for w in (wk, wq, wv))
    k_r = xn @ wkn
    q_r = xn @ wqn
    v_r = xn @ wvn
    s = (q_r @ np.swapaxes(k_r, -1, -2)) * (H ** -0.5)
    tril = np.tril(np.ones((T, T)))
    s = np.where(tril == 0, -np.inf, s)
    s = s - s.max(axis=-1, keepdims=True)
    p = np.exp(s)
    att_ref = (p / p.sum(axis=-1, keepdims=True)) @ v_r

    assert np.allclose(np.asarray(out_f32, np.float64), att_ref,
                       atol=1e-3, rtol=1e-3), "f32-path mismatch vs reference"
    assert np.allclose(np.asarray(out_bf16, np.float64), att_ref,
                       atol=5e-2, rtol=5e-2), "bf16-path mismatch vs reference"

    print("KERNEL_OK")
</pallas_src>

<mosaic_0001>
module attributes {stable_mosaic.version = 11 : i64} {
  func.func @_qkv_proj_kernel(%arg0: i32, %arg1: memref<16x32xf32, #tpu.memory_space<vmem>>, %arg2: memref<32x48xbf16, #tpu.memory_space<vmem>>, %arg3: memref<16x48xbf16, #tpu.memory_space<vmem>>) attributes {dimension_semantics = [#tpu.dimension_semantics<parallel>], iteration_bounds = array<i64: 1>, scalar_prefetch = 0 : i64, scratch_operands = 0 : i64, tpu.core_type = #tpu.core_type<tc>, window_params = [{transform_indices = @transform_0, window_bounds = array<i64: 16, 32>}, {pipeline_mode = #tpu.pipeline_mode<synchronous>, transform_indices = @transform_1, window_bounds = array<i64: 32, 48>}, {transform_indices = @transform_2, window_bounds = array<i64: 16, 48>}]} {
    %c0 = arith.constant 0 : index
    %c0_0 = arith.constant 0 : index
    %0 = vector.load %arg1[%c0, %c0_0] : memref<16x32xf32, #tpu.memory_space<vmem>>, vector<16x32xf32>
    %1 = arith.truncf %0 : vector<16x32xf32> to vector<16x32xbf16>
    %c0_1 = arith.constant 0 : index
    %c0_2 = arith.constant 0 : index
    %2 = vector.load %arg2[%c0_1, %c0_2] : memref<32x48xbf16, #tpu.memory_space<vmem>>, vector<32x48xbf16>
    %cst = arith.constant dense<0.000000e+00> : vector<16x48xf32>
    %3 = tpu.matmul %1, %2, %cst {dimension_numbers = #tpu.dot_dimension_numbers<[1], [0], [0], [1], [0, 0, 1, 1], [], []>} : vector<16x32xbf16>, vector<32x48xbf16>, vector<16x48xf32> -> vector<16x48xf32>
    %4 = arith.truncf %3 : vector<16x48xf32> to vector<16x48xbf16>
    %c0_3 = arith.constant 0 : index
    %c0_4 = arith.constant 0 : index
    %5 = vector.load %arg3[%c0_3, %c0_4] : memref<16x48xbf16, #tpu.memory_space<vmem>>, vector<16x48xbf16>
    tpu.vector_store %arg3[%c0_3, %c0_4], %4 {strides = array<i32>} : memref<16x48xbf16, #tpu.memory_space<vmem>>, vector<16x48xbf16>,
    return
  }
  func.func @transform_0(%arg0: i32) -> (i32, i32) {
    %c0_i32 = arith.constant 0 : i32
    %c0_i32_0 = arith.constant 0 : i32
    return %arg0, %c0_i32 : i32, i32
  }
  func.func @transform_1(%arg0: i32) -> (i32, i32) {
    %c0_i32 = arith.constant 0 : i32
    %c0_i32_0 = arith.constant 0 : i32
    %c0_i32_1 = arith.constant 0 : i32
    return %c0_i32, %c0_i32_0 : i32, i32
  }
  func.func @transform_2(%arg0: i32) -> (i32, i32) {
    %c0_i32 = arith.constant 0 : i32
    %c0_i32_0 = arith.constant 0 : i32
    return %arg0, %c0_i32 : i32, i32
  }
}

</mosaic_0001>

<bundles_post_ra>
// kernel: tpu_custom_call.1
= control target key start
LH: loop header
LB: loop body
LE: loop exit
PB: predicated region body
PF: predicated region fallthrough
CT: control target
= control target key end

     0   :  { %7 = vsyncpa [#allocation3], 0  ;;  %s301_s0 = inlined_call_operand.hbm [shape: f32[16,32], index: 0, kind: input, shape index: {}]   ;;  %s302_s1 = inlined_call_operand.hbm [shape: bf16[32,48], index: 1, kind: input, shape index: {}]   ;;  %s303_s2 = inlined_call_operand.hbm [shape: bf16[16,48], index: 2, kind: output, shape index: {}]  }
   0x1   :  { %8 = vsyncpa [#allocation6], 0 }
   0x2   :  { %9 = vsyncpa [#allocation4], 0  ;;  %s235_s9 = smov [#allocation2]   ;;  %s163_s13 = scalar_lea.hbm %s301_s0, 256 }
   0x3   :  { %s15_s10 = sshll.u32 %s235_s9, 4  ;;  %p164_p0 = scmp.ne.s32.totalorder %s301_s0, %s163_s13  ;;  %s16_s10 = int_to_ptr.vmem [resolvable:$true] %s15_s10 }
   0x4   :  { %p167_p1 = scmp.lt.u32.totalorder %s163_s13, %s301_s0 }
   0x6   :  { %p169_p2 = pnand %p167_p1, %p164_p0 }
   0x8   :  { %172 = shalt.err (!%p169_p2)
}
   0x9   :  { %s173_s18 = scalar_lea.vmem %s16_s10, 256  ;;  %p178_p4 = scmp.lt.s32.totalorder %s16_s10, %s16_s10 }
   0xa   :  { %p174_p3 = scmp.ne.s32.totalorder %s16_s10, %s173_s18  ;;  %p179_p5 = scmp.lt.s32.totalorder %s173_s18, %s173_s18 }
   0xc   :  { %p180_p6 = por %p179_p5, %p178_p4 }
   0xe   :  { %p181_p7 = pnand %p180_p6, %p174_p3 }
  0x10   :  { %184 = shalt.err (!%p181_p7)
}
  0x11   :  { %s236_s19 = smov 128   ;;  %s237_s20 = smov 8  }
  0x12   :  { %21 = dma.hbm_to_vmem [thread:$0]  %s301_s0, 256, %s16_s10, [#allocation3], %s236_s19, %s236_s19, %s237_s20  }
  0x13   :  { %s238_s23 = smov [#allocation5]   ;;  %s185_s27 = scalar_lea.hbm %s302_s1, 256 }
  0x14   :  { %s27_s24 = sshll.u32 %s238_s23, 4  ;;  %p186_p8 = scmp.ne.s32.totalorder %s302_s1, %s185_s27  ;;  %s28_s24 = int_to_ptr.vmem [resolvable:$true] %s27_s24 }
  0x15   :  { %p189_p9 = scmp.lt.u32.totalorder %s185_s27, %s302_s1 }
  0x17   :  { %p191_p10 = pnand %p189_p9, %p186_p8 }
  0x19   :  { %194 = shalt.err (!%p191_p10)
}
  0x1a   :  { %s195_s4 = scalar_lea.vmem %s28_s24, 256  ;;  %p200_p12 = scmp.lt.s32.totalorder %s28_s24, %s28_s24 }
  0x1b   :  { %p196_p11 = scmp.ne.s32.totalorder %s28_s24, %s195_s4  ;;  %p201_p13 = scmp.lt.s32.totalorder %s195_s4, %s195_s4 }
  0x1d   :  { %p202_p0 = por %p201_p13, %p200_p12 }
  0x1f   :  { %p203_p1 = pnand %p202_p0, %p196_p11 }
  0x21   :  { %206 = shalt.err (!%p203_p1)
}
  0x22   :  { %s239_s0 = smov 64   ;;  %s240_s5 = smov 4  }
  0x23   :  { %33 = dma.hbm_to_vmem [thread:$0]  %s302_s1, 256, %s28_s24, [#allocation6], %s239_s0, %s239_s0, %s240_s5  }
  0x24   :  { %229 = dma.done.wait [#allocation3], 256  }
  0x25   :  { %230 = vsyncadd [#allocation3], 4294967040 }
  0x26   :  { %231 = dma.done.wait [#allocation6], 256  }
  0x27   :  { %232 = vsyncadd [#allocation6], 4294967040  ;;  %v241_v0 = vmov 0.0   ;;  %vm242_vm0 = vmmov 0   ;;  %v161_v1 = vld [vmem:[#allocation5] sm:$0xff]   ;;  %v162_v2 = vld [vmem:[#allocation5 + $0x8] sm:$0xff]  }
  0x28   :  { %144 = vmatprep.subr.bf16.mxu0 %v241_v0  ;;  %148 = vmatprep.mubr.msk.bf16.mxu0 %vm242_vm0, %v241_v0  ;;  %v41_v3 = vld [vmem:[#allocation2] sm:$0xff]  ;;  %v42_v4 = vld [vmem:[#allocation2 + $0x8] sm:$0xff]  ;;  %vm60_vm1 = vcmask 261120   ;;  %vm113_vm2 = vcmask 388096   ;;  %s243_s1 = smov [#allocation7]  }
  0x29   :  { %145 = vmatpush3.bf16.msra.mxu0 %v161_v1  ;;  %v43_v5 = vpack.c.bf16 %v42_v4, %v41_v3  ;;  %s121_s8 = sshll.u32 %s243_s1, 4  ;;  %s122_s8 = int_to_ptr.vmem [resolvable:$true] %s121_s8 }
  0x2a   :  { %146 = vmatprep.subr.bf16.mxu0 %v241_v0  ;;  %s207_s9 = scalar_lea.vmem %s122_s8, 128  ;;  %p212_p3 = scmp.lt.s32.totalorder %s122_s8, %s122_s8 }
  0x2b   :  { %p208_p2 = scmp.ne.s32.totalorder %s122_s8, %s207_s9  ;;  %p213_p4 = scmp.lt.s32.totalorder %s207_s9, %s207_s9 }
  0x2d   :  { %147 = vmatpush3.bf16.msra.mxu0 %v162_v2  ;;  %p214_p5 = por %p213_p4, %p212_p3 }
  0x2f   :  { %p215_p6 = pnand %p214_p5, %p208_p2 }
  0x30   :  { %149 = vmatmul.mubr.msk.bf16.vlgmr.msra.gmra.mrb[0].mxu0 %vm60_vm1, %v43_v5 }
 0x103   :  { %v98_v6 = vpop.f32.mrb[0].mxu0 }
 0x104   :  { %v139_v7 = vpack.c.bf16 %v98_v6, %v98_v6  ;;  %v150_v8 = vpop.f32.mrb[1].mxu0 }
 0x105   :  { %v101_v9 = vpop.f32.mrb[2].mxu0 }
 0x106   :  { %v140_v10 = vpack.c.bf16 %v101_v9, %v101_v9  ;;  %v151_v11 = vpop.f32.mrb[3].mxu0  ;;  %114 = vst.msk [vmem:[#allocation7] sm:$0xf] %vm113_vm2, %v139_v7 }
 0x108   :  { %115 = vst.msk [vmem:[#allocation7 + $0x4] sm:$0xf] %vm113_vm2, %v140_v10 }
 0x109   :  { %218 = shalt.err (!%p215_p6)
}
 0x10a   :  { %s219_s12 = scalar_lea.hbm %s303_s2, 128 }
 0x10b   :  { %p220_p7 = scmp.ne.s32.totalorder %s303_s2, %s219_s12  ;;  %p223_p8 = scmp.lt.u32.totalorder %s219_s12, %s303_s2 }
 0x10d   :  { %p225_p9 = pnand %p223_p8, %p220_p7 }
 0x10f   :  { %228 = shalt.err (!%p225_p9)
}
 0x110   :  { %127 = dma.vmem_to_hbm [thread:$0]  %s122_s8, 128, %s303_s2, [#allocation4], %s239_s0, %s239_s0, %s240_s5  }
 0x111   :  { %233 = dma.done.wait [#allocation4], 128  }
 0x112   :  { %234 = vsyncadd [#allocation4], 4294967168 }
 0x113   :  { %131 = vsyncpa [#allocation3], 1 }
 0x114   :  { %132 = vsyncpa [#allocation6], 1 }
 0x115   :  { %133 = vsyncpa [#allocation4], 1 }

</bundles_post_ra>
